<compile_context>
chip_gen: v7x
topology: tpu7x:2x2x1
jax: 0.10.0
libtpu: 0.0.40
codegen_flags: <defaults>
</compile_context>

<pallas_src>
import jax
import jax.numpy as jnp
from jax.experimental import pallas as pl
from jax.experimental.pallas import tpu as pltpu

NUM_AGENTS = 2

H1_PAD = 256    # fcs1_units = 200 -> padded to 256 (lane-dense, one 256-wide MXU pass)
H2_PAD = 256    # fc2_units  = 150 -> padded to 256
OUT_PAD = 128   # q dim 1 -> lane-dense 128-wide output tile; q lives in column 0
TILE_B_MAX = 256


def _round_up(x, m):
    return (x + m - 1) // m * m


def _critic_kernel(s_ref, a_ref, w1s_ref, w1a_ref, b1_ref,
                   w2_ref, b2_ref, w3_ref, b3_ref, out_ref):
    """Fused 3-layer MLP on one batch tile (concat folded into two dots)."""
    h1 = (jnp.dot(s_ref[...], w1s_ref[...], preferred_element_type=jnp.float32)
          + jnp.dot(a_ref[...], w1a_ref[...], preferred_element_type=jnp.float32)
          + b1_ref[...])
    h1 = jnp.maximum(h1, 0.0)
    h2 = jnp.dot(h1, w2_ref[...], preferred_element_type=jnp.float32) + b2_ref[...]
    h2 = jnp.maximum(h2, 0.0)
    out_ref[...] = (jnp.dot(h2, w3_ref[...], preferred_element_type=jnp.float32)
                    + b3_ref[...])


def prepare_critic_params(params, state_size, action_size):
    """One-time layout prep (kept OUT of the per-step hot path).

    - transpose [out, in] -> [in, out]
    - split W1 rows into state / action halves (removes runtime concat)
    - zero-pad hidden dims 200->256, 150->256 and the output dim 1->128
      so all contraction dims / outputs are multiples of 128 lanes.
    Zero padding is exact: padded h1/h2 columns are relu(0)=0 and the padded
    W2/W3 rows only ever multiply those zeros.
    """
    s_in = state_size * NUM_AGENTS
    a_in = action_size * NUM_AGENTS
    h1 = params["w1"].shape[0]
    h2 = params["w2"].shape[0]

    w1t = params["w1"].T.astype(jnp.float32)          # [s_in + a_in, h1]
    w2t = params["w2"].T.astype(jnp.float32)          # [h1, h2]
    w3t = params["w3"].T.astype(jnp.float32)          # [h2, 1]

    w1p = jnp.zeros((s_in + a_in, H1_PAD), jnp.float32).at[:, :h1].set(w1t)
    w2p = jnp.zeros((H1_PAD, H2_PAD), jnp.float32).at[:h1, :h2].set(w2t)
    w3p = jnp.zeros((H2_PAD, OUT_PAD), jnp.float32).at[:h2, :1].set(w3t)

    b1p = jnp.zeros((1, H1_PAD), jnp.float32).at[0, :h1].set(params["b1"].astype(jnp.float32))
    b2p = jnp.zeros((1, H2_PAD), jnp.float32).at[0, :h2].set(params["b2"].astype(jnp.float32))
    b3p = jnp.zeros((1, OUT_PAD), jnp.float32).at[0, :1].set(params["b3"].astype(jnp.float32))

    return {
        "w1s": w1p[:s_in], "w1a": w1p[s_in:], "b1": b1p,
        "w2": w2p, "b2": b2p, "w3": w3p, "b3": b3p,
    }


@jax.jit
def critic_forward(state, action, prep):
    """state: [B, S*num_agents], action: [B, A*num_agents]  ->  q: [B, 1]."""
    state = state.astype(jnp.float32)
    action = action.astype(jnp.float32)
    B, s_in = state.shape
    a_in = action.shape[1]

    # Batch tile: multiple of 8 sublanes, capped so weights + double-buffered
    # activation tiles stay far under the scoped-VMEM limit (also on v7x's 64 MiB).
    tb = min(TILE_B_MAX, _round_up(B, 8))
    Bp = _round_up(B, tb)
    if Bp != B:
        state = jnp.pad(state, ((0, Bp - B), (0, 0)))
        action = jnp.pad(action, ((0, Bp - B), (0, 0)))

    batch_spec = lambda cols: pl.BlockSpec((tb, cols), lambda i: (i, 0))
    resident = lambda arr: pl.BlockSpec(arr.shape, lambda i: (0, 0))  # stays in VMEM

    out = pl.pallas_call(
        _critic_kernel,
        out_shape=jax.ShapeDtypeStruct((Bp, OUT_PAD), jnp.float32),
        grid=(Bp // tb,),
        in_specs=[
            batch_spec(s_in),
            batch_spec(a_in),
            resident(prep["w1s"]),
            resident(prep["w1a"]),
            resident(prep["b1"]),
            resident(prep["w2"]),
            resident(prep["b2"]),
            resident(prep["w3"]),
            resident(prep["b3"]),
        ],
        out_specs=batch_spec(OUT_PAD),
        compiler_params=pltpu.CompilerParams(
            dimension_semantics=("parallel",)),
    )(state, action, prep["w1s"], prep["w1a"], prep["b1"],
      prep["w2"], prep["b2"], prep["w3"], prep["b3"])

    return out[:B, :1]


def init_critic_params(key, state_size, action_size,
                       fcs1_units=200, fc2_units=150):
    """Deterministic synthetic init matching the PyTorch module's ranges.

    PyTorch weight shape is [out, in]; hidden_init uses weight.size()[0] == out_features,
    so lim = 1/sqrt(out_features) for fcs1/fc2 (reproduced faithfully).
    Biases keep nn.Linear's default U(-1/sqrt(in_features), 1/sqrt(in_features)).
    """
    in_dim = (state_size + action_size) * NUM_AGENTS
    k = jax.random.split(key, 6)

    lim1 = 1.0 / jnp.sqrt(float(fcs1_units))
    lim2 = 1.0 / jnp.sqrt(float(fc2_units))

    return {
        "w1": jax.random.uniform(k[0], (fcs1_units, in_dim), jnp.float32, -lim1, lim1),
        "b1": jax.random.uniform(k[1], (fcs1_units,), jnp.float32,
                                 -1.0 / jnp.sqrt(float(in_dim)), 1.0 / jnp.sqrt(float(in_dim))),
        "w2": jax.random.uniform(k[2], (fc2_units, fcs1_units), jnp.float32, -lim2, lim2),
        "b2": jax.random.uniform(k[3], (fc2_units,), jnp.float32,
                                 -1.0 / jnp.sqrt(float(fcs1_units)), 1.0 / jnp.sqrt(float(fcs1_units))),
        "w3": jax.random.uniform(k[4], (1, fc2_units), jnp.float32, -3e-3, 3e-3),
        "b3": jax.random.uniform(k[5], (1,), jnp.float32,
                                 -1.0 / jnp.sqrt(float(fc2_units)), 1.0 / jnp.sqrt(float(fc2_units))),
    }


def _reference_forward(state, action, params):
    xs = jnp.concatenate([state, action], axis=1)
    h1 = jax.nn.relu(xs @ params["w1"].T + params["b1"])
    h2 = jax.nn.relu(h1 @ params["w2"].T + params["b2"])
    return h2 @ params["w3"].T + params["b3"]


if __name__ == "__main__":
    # Small shapes consistent with a 2-agent Tennis-style setup.
    BATCH = 8
    STATE_SIZE = 24
    ACTION_SIZE = 2

    key = jax.random.PRNGKey(0)
    k_params, k_state, k_action = jax.random.split(key, 3)

    params = init_critic_params(k_params, STATE_SIZE, ACTION_SIZE)
    prep = prepare_critic_params(params, STATE_SIZE, ACTION_SIZE)  # one-time layout prep

    state = jax.random.normal(k_state, (BATCH, STATE_SIZE * NUM_AGENTS), jnp.float32)
    action = jax.random.uniform(k_action, (BATCH, ACTION_SIZE * NUM_AGENTS), jnp.float32,
                                minval=-1.0, maxval=1.0)

    q = critic_forward(state, action, prep)
    q = jax.block_until_ready(q)

    q_ref = _reference_forward(state, action, params)
    assert q.shape == (BATCH, 1), q.shape
    assert jnp.allclose(q, q_ref, atol=1e-4, rtol=1e-4), (q, q_ref)

    print("KERNEL_OK")
</pallas_src>

<mosaic_0001>
module attributes {stable_mosaic.version = 11 : i64} {
  func.func @_critic_kernel(%arg0: i32, %arg1: memref<8x48xf32, #tpu.memory_space<vmem>>, %arg2: memref<8x4xf32, #tpu.memory_space<vmem>>, %arg3: memref<48x256xf32, #tpu.memory_space<vmem>>, %arg4: memref<4x256xf32, #tpu.memory_space<vmem>>, %arg5: memref<1x256xf32, #tpu.memory_space<vmem>>, %arg6: memref<256x256xf32, #tpu.memory_space<vmem>>, %arg7: memref<1x256xf32, #tpu.memory_space<vmem>>, %arg8: memref<256x128xf32, #tpu.memory_space<vmem>>, %arg9: memref<1x128xf32, #tpu.memory_space<vmem>>, %arg10: memref<8x128xf32, #tpu.memory_space<vmem>>) attributes {dimension_semantics = [#tpu.dimension_semantics<parallel>], iteration_bounds = array<i64: 1>, scalar_prefetch = 0 : i64, scratch_operands = 0 : i64, tpu.core_type = #tpu.core_type<tc>, window_params = [{transform_indices = @transform_0, window_bounds = array<i64: 8, 48>}, {transform_indices = @transform_1, window_bounds = array<i64: 8, 4>}, {pipeline_mode = #tpu.pipeline_mode<synchronous>, transform_indices = @transform_2, window_bounds = array<i64: 48, 256>}, {pipeline_mode = #tpu.pipeline_mode<synchronous>, transform_indices = @transform_3, window_bounds = array<i64: 4, 256>}, {pipeline_mode = #tpu.pipeline_mode<synchronous>, transform_indices = @transform_4, window_bounds = array<i64: 1, 256>}, {pipeline_mode = #tpu.pipeline_mode<synchronous>, transform_indices = @transform_5, window_bounds = array<i64: 256, 256>}, {pipeline_mode = #tpu.pipeline_mode<synchronous>, transform_indices = @transform_6, window_bounds = array<i64: 1, 256>}, {pipeline_mode = #tpu.pipeline_mode<synchronous>, transform_indices = @transform_7, window_bounds = array<i64: 256, 128>}, {pipeline_mode = #tpu.pipeline_mode<synchronous>, transform_indices = @transform_8, window_bounds = array<i64: 1, 128>}, {transform_indices = @transform_9, window_bounds = array<i64: 8, 128>}]} {
    %c0 = arith.constant 0 : index
    %c0_0 = arith.constant 0 : index
    %0 = vector.load %arg1[%c0, %c0_0] : memref<8x48xf32, #tpu.memory_space<vmem>>, vector<8x48xf32>
    %c0_1 = arith.constant 0 : index
    %c0_2 = arith.constant 0 : index
    %1 = vector.load %arg3[%c0_1, %c0_2] : memref<48x256xf32, #tpu.memory_space<vmem>>, vector<48x256xf32>
    %cst = arith.constant dense<0.000000e+00> : vector<8x256xf32>
    %2 = tpu.matmul %0, %1, %cst {dimension_numbers = #tpu.dot_dimension_numbers<[1], [0], [0], [1], [0, 0, 1, 1], [], []>} : vector<8x48xf32>, vector<48x256xf32>, vector<8x256xf32> -> vector<8x256xf32>
    %c0_3 = arith.constant 0 : index
    %c0_4 = arith.constant 0 : index
    %3 = vector.load %arg2[%c0_3, %c0_4] : memref<8x4xf32, #tpu.memory_space<vmem>>, vector<8x4xf32>
    %c0_5 = arith.constant 0 : index
    %c0_6 = arith.constant 0 : index
    %4 = vector.load %arg4[%c0_5, %c0_6] : memref<4x256xf32, #tpu.memory_space<vmem>>, vector<4x256xf32>
    %cst_7 = arith.constant dense<0.000000e+00> : vector<8x256xf32>
    %5 = tpu.matmul %3, %4, %cst_7 {dimension_numbers = #tpu.dot_dimension_numbers<[1], [0], [0], [1], [0, 0, 1, 1], [], []>} : vector<8x4xf32>, vector<4x256xf32>, vector<8x256xf32> -> vector<8x256xf32>
    %6 = arith.addf %2, %5 : vector<8x256xf32>
    %c0_8 = arith.constant 0 : index
    %c0_9 = arith.constant 0 : index
    %7 = vector.load %arg5[%c0_8, %c0_9] : memref<1x256xf32, #tpu.memory_space<vmem>>, vector<1x256xf32>
    %8 = vector.broadcast %7 : vector<1x256xf32> to vector<8x256xf32>
    %9 = arith.addf %6, %8 : vector<8x256xf32>
    %cst_10 = arith.constant 0.000000e+00 : f32
    %10 = vector.broadcast %cst_10 : f32 to vector<8x256xf32>
    %11 = arith.maximumf %9, %10 : vector<8x256xf32>
    %c0_11 = arith.constant 0 : index
    %c0_12 = arith.constant 0 : index
    %12 = vector.load %arg6[%c0_11, %c0_12] : memref<256x256xf32, #tpu.memory_space<vmem>>, vector<256x256xf32>
    %cst_13 = arith.constant dense<0.000000e+00> : vector<8x256xf32>
    %13 = tpu.matmul %11, %12, %cst_13 {dimension_numbers = #tpu.dot_dimension_numbers<[1], [0], [0], [1], [0, 0, 1, 1], [], []>} : vector<8x256xf32>, vector<256x256xf32>, vector<8x256xf32> -> vector<8x256xf32>
    %c0_14 = arith.constant 0 : index
    %c0_15 = arith.constant 0 : index
    %14 = vector.load %arg7[%c0_14, %c0_15] : memref<1x256xf32, #tpu.memory_space<vmem>>, vector<1x256xf32>
    %15 = vector.broadcast %14 : vector<1x256xf32> to vector<8x256xf32>
    %16 = arith.addf %13, %15 : vector<8x256xf32>
    %cst_16 = arith.constant 0.000000e+00 : f32
    %17 = vector.broadcast %cst_16 : f32 to vector<8x256xf32>
    %18 = arith.maximumf %16, %17 : vector<8x256xf32>
    %c0_17 = arith.constant 0 : index
    %c0_18 = arith.constant 0 : index
    %19 = vector.load %arg8[%c0_17, %c0_18] : memref<256x128xf32, #tpu.memory_space<vmem>>, vector<256x128xf32>
    %cst_19 = arith.constant dense<0.000000e+00> : vector<8x128xf32>
    %20 = tpu.matmul %18, %19, %cst_19 {dimension_numbers = #tpu.dot_dimension_numbers<[1], [0], [0], [1], [0, 0, 1, 1], [], []>} : vector<8x256xf32>, vector<256x128xf32>, vector<8x128xf32> -> vector<8x128xf32>
    %c0_20 = arith.constant 0 : index
    %c0_21 = arith.constant 0 : index
    %21 = vector.load %arg9[%c0_20, %c0_21] : memref<1x128xf32, #tpu.memory_space<vmem>>, vector<1x128xf32>
    %22 = vector.broadcast %21 : vector<1x128xf32> to vector<8x128xf32>
    %23 = arith.addf %20, %22 : vector<8x128xf32>
    %c0_22 = arith.constant 0 : index
    %c0_23 = arith.constant 0 : index
    %24 = vector.load %arg10[%c0_22, %c0_23] : memref<8x128xf32, #tpu.memory_space<vmem>>, vector<8x128xf32>
    tpu.vector_store %arg10[%c0_22, %c0_23], %23 {strides = array<i32>} : memref<8x128xf32, #tpu.memory_space<vmem>>, vector<8x128xf32>,
    return
  }
  func.func @transform_0(%arg0: i32) -> (i32, i32) {
    %c0_i32 = arith.constant 0 : i32
    %c0_i32_0 = arith.constant 0 : i32
    return %arg0, %c0_i32 : i32, i32
  }
  func.func @transform_1(%arg0: i32) -> (i32, i32) {
    %c0_i32 = arith.constant 0 : i32
    %c0_i32_0 = arith.constant 0 : i32
    return %arg0, %c0_i32 : i32, i32
  }
  func.func @transform_2(%arg0: i32) -> (i32, i32) {
    %c0_i32 = arith.constant 0 : i32
    %c0_i32_0 = arith.constant 0 : i32
    %c0_i32_1 = arith.constant 0 : i32
    return %c0_i32, %c0_i32_0 : i32, i32
  }
  func.func @transform_3(%arg0: i32) -> (i32, i32) {
    %c0_i32 = arith.constant 0 : i32
    %c0_i32_0 = arith.constant 0 : i32
    %c0_i32_1 = arith.constant 0 : i32
    return %c0_i32, %c0_i32_0 : i32, i32
  }
  func.func @transform_4(%arg0: i32) -> (i32, i32) {
    %c0_i32 = arith.constant 0 : i32
    %c0_i32_0 = arith.constant 0 : i32
    %c0_i32_1 = arith.constant 0 : i32
    return %c0_i32, %c0_i32_0 : i32, i32
  }
  func.func @transform_5(%arg0: i32) -> (i32, i32) {
    %c0_i32 = arith.constant 0 : i32
    %c0_i32_0 = arith.constant 0 : i32
    %c0_i32_1 = arith.constant 0 : i32
    return %c0_i32, %c0_i32_0 : i32, i32
  }
  func.func @transform_6(%arg0: i32) -> (i32, i32) {
    %c0_i32 = arith.constant 0 : i32
    %c0_i32_0 = arith.constant 0 : i32
    %c0_i32_1 = arith.constant 0 : i32
    return %c0_i32, %c0_i32_0 : i32, i32
  }
  func.func @transform_7(%arg0: i32) -> (i32, i32) {
    %c0_i32 = arith.constant 0 : i32
    %c0_i32_0 = arith.constant 0 : i32
    %c0_i32_1 = arith.constant 0 : i32
    return %c0_i32, %c0_i32_0 : i32, i32
  }
  func.func @transform_8(%arg0: i32) -> (i32, i32) {
    %c0_i32 = arith.constant 0 : i32
    %c0_i32_0 = arith.constant 0 : i32
    %c0_i32_1 = arith.constant 0 : i32
    return %c0_i32, %c0_i32_0 : i32, i32
  }
  func.func @transform_9(%arg0: i32) -> (i32, i32) {
    %c0_i32 = arith.constant 0 : i32
    %c0_i32_0 = arith.constant 0 : i32
    return %arg0, %c0_i32 : i32, i32
  }
}

</mosaic_0001>

<bundles_post_ra>
// kernel: critic_forward.1
= control target key start
LH: loop header
LB: loop body
LE: loop exit
PB: predicated region body
PF: predicated region fallthrough
CT: control target
= control target key end

     0   :  { %14 = vsyncpa [#allocation3], 0  ;;  %s879_s0 = inlined_call_operand.vmem [shape: f32[8,48], index: 0, kind: input, shape index: {}]   ;;  %s880_s1 = inlined_call_operand.vmem [shape: f32[8,4], index: 1, kind: input, shape index: {}]   ;;  %s881_s2 = inlined_call_operand.hbm [shape: f32[48,256], index: 2, kind: input, shape index: {}]   ;;  %s882_s3 = inlined_call_operand.vmem [shape: f32[4,256], index: 3, kind: input, shape index: {}]   ;;  %s883_s4 = inlined_call_operand.vmem [shape: f32[1,256], index: 4, kind: input, shape index: {}]   ;;  %s884_s5 = inlined_call_operand.hbm [shape: f32[256,256], index: 5, kind: input, shape index: {}]   ;;  %s885_s6 = inlined_call_operand.vmem [shape: f32[1,256], index: 6, kind: input, shape index: {}]   ;;  %s886_s7 = inlined_call_operand.hbm [shape: f32[256,128], index: 7, kind: input, shape index: {}]   ;;  %s887_s8 = inlined_call_operand.vmem [shape: f32[1,128], index: 8, kind: input, shape index: {}]   ;;  %s888_s9 = inlined_call_operand.vmem [shape: f32[8,128], index: 9, kind: output, shape index: {}]  }
   0x1   :  { %15 = vsyncpa [#allocation5], 0  ;;  %s755_s30 = smov [#allocation4]   ;;  %s756_s11 = smov [#allocation2]  }
   0x2   :  { %s41_s10 = sshll.u32 %s755_s30, 4  ;;  %s25_s12 = sshll.u32 %s756_s11, 4  ;;  %s42_s10 = int_to_ptr.vmem [resolvable:$true] %s41_s10  ;;  %s813_s12 = int_to_ptr.vmem [resolvable:$true] %s25_s12 }
   0x3   :  { %s685_s15 = scalar_lea.hbm %s884_s5, 8192 }
   0x4   :  { %p686_p0 = scmp.ne.s32.totalorder %s884_s5, %s685_s15  ;;  %p689_p1 = scmp.lt.u32.totalorder %s685_s15, %s884_s5 }
   0x6   :  { %p691_p2 = pnand %p689_p1, %p686_p0 }
   0x8   :  { %694 = shalt.err (!%p691_p2)
}
   0x9   :  { %s695_s20 = scalar_lea.vmem %s42_s10, 8192  ;;  %p700_p4 = scmp.lt.s32.totalorder %s42_s10, %s42_s10 }
   0xa   :  { %p696_p3 = scmp.ne.s32.totalorder %s42_s10, %s695_s20  ;;  %p701_p5 = scmp.lt.s32.totalorder %s695_s20, %s695_s20 }
   0xc   :  { %p702_p6 = por %p701_p5, %p700_p4 }
   0xe   :  { %p703_p7 = pnand %p702_p6, %p696_p3 }
  0x10   :  { %706 = shalt.err (!%p703_p7)
}
  0x11   :  { %s757_s21 = smov 256   ;;  %s758_s22 = smov 16  }
  0x12   :  { %47 = dma.hbm_to_vmem [thread:$0]  %s884_s5, 8192, %s42_s10, [#allocation5], %s757_s21, %s757_s21, %s758_s22  }
  0x13   :  { %s707_s27 = scalar_lea.hbm %s881_s2, 1536 }
  0x14   :  { %p708_p8 = scmp.ne.s32.totalorder %s881_s2, %s707_s27  ;;  %p711_p9 = scmp.lt.u32.totalorder %s707_s27, %s881_s2 }
  0x16   :  { %p713_p10 = pnand %p711_p9, %p708_p8 }
  0x18   :  { %716 = shalt.err (!%p713_p10)
}
  0x19   :  { %s717_s13 = scalar_lea.vmem %s813_s12, 1536  ;;  %p722_p12 = scmp.lt.s32.totalorder %s813_s12, %s813_s12 }
  0x1a   :  { %p718_p11 = scmp.ne.s32.totalorder %s813_s12, %s717_s13  ;;  %p723_p13 = scmp.lt.s32.totalorder %s717_s13, %s717_s13 }
  0x1c   :  { %p724_p0 = por %p723_p13, %p722_p12 }
  0x1e   :  { %p725_p1 = pnand %p724_p0, %p718_p11 }
  0x20   :  { %728 = shalt.err (!%p725_p1)
}
  0x21   :  { %31 = dma.hbm_to_vmem [thread:$0]  %s881_s2, 1536, %s813_s12, [#allocation3], %s757_s21, %s757_s21, %s758_s22  }
  0x22   :  { %s759_s14 = smov [#allocation6]   ;;  %s729_s18 = scalar_lea.hbm %s886_s7, 4096 }
  0x23   :  { %s55_s15 = sshll.u32 %s759_s14, 4  ;;  %p730_p2 = scmp.ne.s32.totalorder %s886_s7, %s729_s18  ;;  %s56_s15 = int_to_ptr.vmem [resolvable:$true] %s55_s15 }
  0x24   :  { %p733_p3 = scmp.lt.u32.totalorder %s729_s18, %s886_s7 }
  0x26   :  { %p735_p4 = pnand %p733_p3, %p730_p2 }
  0x28   :  { %738 = shalt.err (!%p735_p4)
}
  0x29   :  { %s739_s25 = scalar_lea.vmem %s56_s15, 4096  ;;  %p744_p6 = scmp.lt.s32.totalorder %s56_s15, %s56_s15 }
  0x2a   :  { %p740_p5 = scmp.ne.s32.totalorder %s56_s15, %s739_s25  ;;  %p745_p7 = scmp.lt.s32.totalorder %s739_s25, %s739_s25 }
  0x2c   :  { %p746_p8 = por %p745_p7, %p744_p6 }
  0x2e   :  { %p747_p9 = pnand %p746_p8, %p740_p5 }
  0x30   :  { %750 = shalt.err (!%p747_p9)
}
  0x31   :  { %s760_s2 = smov 128   ;;  %s761_s12 = smov 8  }
  0x32   :  { %61 = dma.hbm_to_vmem [thread:$0]  %s886_s7, 4096, %s56_s15, [#allocation5], %s760_s2, %s760_s2, %s761_s12  }
  0x33   :  { %751 = dma.done.wait [#allocation3], 1536  }
  0x34   :  { %752 = vsyncadd [#allocation3], 4294965760 }
  0x35   :  { %753 = dma.done.wait [#allocation5], 12288  }
  0x36   :  { %754 = vsyncadd [#allocation5], 4294955008  ;;  %v762_v0 = vmov 0.0   ;;  %v87_v1 = vld [vmem:[%s882_s3] sm:$0xff]  ;;  %vm94_vm0 = vcmask 1043456   ;;  %v75_v2 = vld [vmem:[#allocation2 + $0x8] sm:$0xff] }
  0x37   :  { %163 = vmatprep.mubr.f32.mxu0 %v762_v0  ;;  %v77_v3 = vld [vmem:[#allocation2 + $0x18] sm:$0xff]  ;;  %v89_v4 = vcombine.high %v87_v1, %v87_v1  ;;  %v74_v6 = vld [vmem:[#allocation2] sm:$0xff]  ;;  %v76_v7 = vld [vmem:[#allocation2 + $0x10] sm:$0xff]  ;;  %vm90_vm1 = vcmask 31744   ;;  %vm170_vm2 = vcmask 392192  }
  0x38   :  { %v566_v5 = vpack.c.bf16 %v77_v3, %v75_v2  ;;  %v86_v8 = vld [vmem:[%s880_s1] sm:$0xff]  ;;  %v568_v9 = vpack.c.bf16 %v76_v7, %v74_v6  ;;  %v79_v10 = vld [vmem:[#allocation2 + $0x28] sm:$0xff]  ;;  %v81_v11 = vld [vmem:[#allocation2 + $0x38] sm:$0xff] }
  0x39   :  { %526 = vmatprep.subr.msk.mxu0 %vm94_vm0, %v89_v4  ;;  %v570_v12 = vpack.c.bf16 %v81_v11, %v79_v10  ;;  %v78_v13 = vld [vmem:[#allocation2 + $0x20] sm:$0xff]  ;;  %v80_v14 = vld [vmem:[#allocation2 + $0x30] sm:$0xff]  ;;  %v83_v15 = vld [vmem:[#allocation2 + $0x48] sm:$0xff] }
  0x3a   :  { %527 = vmatpush1.msk.msra.mxu0 %vm94_vm0, %v87_v1  ;;  %v85_v16 = vld [vmem:[#allocation2 + $0x58] sm:$0xff]  ;;  %v82_v17 = vld [vmem:[#allocation2 + $0x40] sm:$0xff]  ;;  %v84_v18 = vld [vmem:[#allocation2 + $0x50] sm:$0xff]  ;;  %v572_v22 = vpack.c.bf16 %v80_v14, %v78_v13 }
  0x3b   :  { %567 = vmatprep.subr.bf16.mxu0 %v566_v5  ;;  %528 = vmatmul.mubr.msk.f32.vlgmr.msra.gmra.mrb[0].mxu0 %vm90_vm1, %v86_v8  ;;  %v262_v19 = vld [vmem:[#allocation4 + $0x8] sm:$0xff]  ;;  %v264_v20 = vld [vmem:[#allocation4 + $0x18] sm:$0xff]  ;;  %v261_v21 = vld [vmem:[#allocation4] sm:$0xff]  ;;  %v574_v27 = vpack.c.bf16 %v85_v16, %v83_v15  ;;  %v576_v35 = vpack.c.bf16 %v84_v18, %v82_v17 }
  0x3c   :  { %569 = vmatpush1.bf16.msra.mxu0 %v568_v9  ;;  %238 = vmatprep.mubr.f32.mxu0 %v762_v0  ;;  %v578_v23 = vpack.c.bf16 %v264_v20, %v262_v19  ;;  %v263_v24 = vld [vmem:[#allocation4 + $0x10] sm:$0xff]  ;;  %v266_v25 = vld [vmem:[#allocation4 + $0x28] sm:$0xff]  ;;  %v268_v26 = vld [vmem:[#allocation4 + $0x38] sm:$0xff] }
  0x3d   :  { %571 = vmatprep.subr.bf16.mxu0 %v570_v12  ;;  %v580_v28 = vpack.c.bf16 %v263_v24, %v261_v21  ;;  %v582_v29 = vpack.c.bf16 %v268_v26, %v266_v25  ;;  %v265_v30 = vld [vmem:[#allocation4 + $0x20] sm:$0xff]  ;;  %v267_v31 = vld [vmem:[#allocation4 + $0x30] sm:$0xff]  ;;  %v270_v32 = vld [vmem:[#allocation4 + $0x48] sm:$0xff] }
  0x3e   :  { %579 = vmatprep.subr.bf16.mxu1 %v578_v23  ;;  %v272_v33 = vld [vmem:[#allocation4 + $0x58] sm:$0xff]  ;;  %v584_v34 = vpack.c.bf16 %v267_v31, %v265_v30  ;;  %v269_v37 = vld [vmem:[#allocation4 + $0x40] sm:$0xff]  ;;  %v271_v38 = vld [vmem:[#allocation4 + $0x50] sm:$0xff] }
  0x3f   :  { %581 = vmatpush1.bf16.msra.mxu1 %v580_v28  ;;  %v586_v36 = vpack.c.bf16 %v272_v33, %v270_v32  ;;  %v274_v39 = vld [vmem:[#allocation4 + $0x68] sm:$0xff]  ;;  %v276_v40 = vld [vmem:[#allocation4 + $0x78] sm:$0xff]  ;;  %v588_v41 = vpack.c.bf16 %v271_v38, %v269_v37  ;;  %v73_v42 = vld [vmem:[%s879_s0] sm:$0xff] }
  0x40   :  { %573 = vmatpush1.bf16.msra.mxu0 %v572_v22  ;;  %583 = vmatprep.subr.bf16.mxu1 %v582_v29  ;;  %v590_v43 = vpack.c.bf16 %v276_v40, %v274_v39  ;;  %v273_v44 = vld [vmem:[#allocation4 + $0x60] sm:$0xff]  ;;  %v275_v45 = vld [vmem:[#allocation4 + $0x70] sm:$0xff]  ;;  %v278_v46 = vld [vmem:[#allocation4 + $0x88] sm:$0xff] }
  0x41   :  { %575 = vmatprep.subr.bf16.mxu0 %v574_v27  ;;  %v280_v47 = vld [vmem:[#allocation4 + $0x98] sm:$0xff]  ;;  %v592_v48 = vpack.c.bf16 %v275_v45, %v273_v44  ;;  %v277_v50 = vld [vmem:[#allocation4 + $0x80] sm:$0xff]  ;;  %v279_v51 = vld [vmem:[#allocation4 + $0x90] sm:$0xff] }
  0x42   :  { %v594_v49 = vpack.c.bf16 %v280_v47, %v278_v46  ;;  %v282_v52 = vld [vmem:[#allocation4 + $0xa8] sm:$0xff]  ;;  %v284_v53 = vld [vmem:[#allocation4 + $0xb8] sm:$0xff]  ;;  %v596_v54 = vpack.c.bf16 %v279_v51, %v277_v50  ;;  %v281_v56 = vld [vmem:[#allocation4 + $0xa0] sm:$0xff] }
  0x43   :  { %585 = vmatpush1.bf16.msra.mxu1 %v584_v34  ;;  %v598_v55 = vpack.c.bf16 %v284_v53, %v282_v52  ;;  %v283_v57 = vld [vmem:[#allocation4 + $0xb0] sm:$0xff]  ;;  %v286_v58 = vld [vmem:[#allocation4 + $0xc8] sm:$0xff]  ;;  %v288_v59 = vld [vmem:[#allocation4 + $0xd8] sm:$0xff] }
  0x44   :  { %577 = vmatpush1.bf16.msra.mxu0 %v576_v35  ;;  %587 = vmatprep.subr.bf16.mxu1 %v586_v36  ;;  %v600_v60 = vpack.c.bf16 %v283_v57, %v281_v56  ;;  %v602_v61 = vpack.c.bf16 %v288_v59, %v286_v58  ;;  %v285_v62 = vld [vmem:[#allocation4 + $0xc0] sm:$0xff]  ;;  %v287_v63 = vld [vmem:[#allocation4 + $0xd0] sm:$0xff]  ;;  %v290_v0 = vld [vmem:[#allocation4 + $0xe8] sm:$0xff] }
  0x45   :  { %v292_v1 = vld [vmem:[#allocation4 + $0xf8] sm:$0xff]  ;;  %v604_v2 = vpack.c.bf16 %v287_v63, %v285_v62  ;;  %v289_v4 = vld [vmem:[#allocation4 + $0xe0] sm:$0xff]  ;;  %v291_v5 = vld [vmem:[#allocation4 + $0xf0] sm:$0xff] }
  0x46   :  { %v606_v3 = vpack.c.bf16 %v292_v1, %v290_v0  ;;  %v294_v6 = vld [vmem:[#allocation4 + $0x108] sm:$0xff]  ;;  %v296_v7 = vld [vmem:[#allocation4 + $0x118] sm:$0xff]  ;;  %v608_v8 = vpack.c.bf16 %v291_v5, %v289_v4  ;;  %v293_v10 = vld [vmem:[#allocation4 + $0x100] sm:$0xff] }
  0x47   :  { %529 = vmatmul.mubr.msk.f32.vlgmr.msra.gmra.mrb[0].mxu0 %vm170_vm2, %v73_v42  ;;  %589 = vmatpush1.bf16.msra.mxu1 %v588_v41  ;;  %v610_v9 = vpack.c.bf16 %v296_v7, %v294_v6  ;;  %v295_v11 = vld [vmem:[#allocation4 + $0x110] sm:$0xff]  ;;  %v298_v12 = vld [vmem:[#allocation4 + $0x128] sm:$0xff]  ;;  %v300_v13 = vld [vmem:[#allocation4 + $0x138] sm:$0xff] }
  0x48   :  { %591 = vmatprep.subr.bf16.mxu1 %v590_v43  ;;  %v612_v14 = vpack.c.bf16 %v295_v11, %v293_v10  ;;  %v614_v15 = vpack.c.bf16 %v300_v13, %v298_v12  ;;  %v297_v16 = vld [vmem:[#allocation4 + $0x120] sm:$0xff]  ;;  %v299_v17 = vld [vmem:[#allocation4 + $0x130] sm:$0xff]  ;;  %v302_v18 = vld [vmem:[#allocation4 + $0x148] sm:$0xff] }
  0x49   :  { %v304_v19 = vld [vmem:[#allocation4 + $0x158] sm:$0xff]  ;;  %v616_v20 = vpack.c.bf16 %v299_v17, %v297_v16  ;;  %v301_v22 = vld [vmem:[#allocation4 + $0x140] sm:$0xff]  ;;  %v303_v23 = vld [vmem:[#allocation4 + $0x150] sm:$0xff] }
  0x4a   :  { %v618_v21 = vpack.c.bf16 %v304_v19, %v302_v18  ;;  %v306_v24 = vld [vmem:[#allocation4 + $0x168] sm:$0xff]  ;;  %v308_v25 = vld [vmem:[#allocation4 + $0x178] sm:$0xff]  ;;  %v620_v26 = vpack.c.bf16 %v303_v23, %v301_v22  ;;  %v305_v28 = vld [vmem:[#allocation4 + $0x160] sm:$0xff] }
  0x4b   :  { %593 = vmatpush1.bf16.msra.mxu1 %v592_v48  ;;  %v622_v27 = vpack.c.bf16 %v308_v25, %v306_v24  ;;  %v307_v29 = vld [vmem:[#allocation4 + $0x170] sm:$0xff]  ;;  %v310_v30 = vld [vmem:[#allocation4 + $0x188] sm:$0xff]  ;;  %v312_v31 = vld [vmem:[#allocation4 + $0x198] sm:$0xff] }
  0x4c   :  { %595 = vmatprep.subr.bf16.mxu1 %v594_v49  ;;  %v624_v32 = vpack.c.bf16 %v307_v29, %v305_v28  ;;  %v626_v33 = vpack.c.bf16 %v312_v31, %v310_v30  ;;  %v309_v34 = vld [vmem:[#allocation4 + $0x180] sm:$0xff]  ;;  %v311_v35 = vld [vmem:[#allocation4 + $0x190] sm:$0xff]  ;;  %v314_v36 = vld [vmem:[#allocation4 + $0x1a8] sm:$0xff]  ;;  %v247_v30 = vlaneseq }
  0x4d   :  { %v316_v37 = vld [vmem:[#allocation4 + $0x1b8] sm:$0xff]  ;;  %v628_v38 = vpack.c.bf16 %v311_v35, %v309_v34  ;;  %v313_v40 = vld [vmem:[#allocation4 + $0x1a0] sm:$0xff]  ;;  %v315_v41 = vld [vmem:[#allocation4 + $0x1b0] sm:$0xff] }
  0x4e   :  { %v630_v39 = vpack.c.bf16 %v316_v37, %v314_v36  ;;  %v318_v42 = vld [vmem:[#allocation4 + $0x1c8] sm:$0xff]  ;;  %v320_v43 = vld [vmem:[#allocation4 + $0x1d8] sm:$0xff]  ;;  %v632_v44 = vpack.c.bf16 %v315_v41, %v313_v40  ;;  %v317_v46 = vld [vmem:[#allocation4 + $0x1c0] sm:$0xff]  ;;  %v248_v31 = vshrl.u32 %v247_v30, 7 }
  0x4f   :  { %597 = vmatpush1.bf16.msra.mxu1 %v596_v54  ;;  %v634_v45 = vpack.c.bf16 %v320_v43, %v318_v42  ;;  %v319_v47 = vld [vmem:[#allocation4 + $0x1d0] sm:$0xff]  ;;  %v322_v49 = vld [vmem:[#allocation4 + $0x1e8] sm:$0xff]  ;;  %v324_v50 = vld [vmem:[#allocation4 + $0x1f8] sm:$0xff] }
  0x50   :  { %599 = vmatprep.subr.bf16.mxu1 %v598_v55  ;;  %v636_v48 = vpack.c.bf16 %v319_v47, %v317_v46  ;;  %v638_v51 = vpack.c.bf16 %v324_v50, %v322_v49  ;;  %v321_v52 = vld [vmem:[#allocation4 + $0x1e0] sm:$0xff]  ;;  %v323_v53 = vld [vmem:[#allocation4 + $0x1f0] sm:$0xff]  ;;  %v427_v56 = vld [vmem:[#allocation6 + $0x88] sm:$0xff]  ;;  %v253_v34 = vsub.s32 1, %v248_v31 }
  0x51   :  { %v640_v54 = vpack.c.bf16 %v323_v53, %v321_v52  ;;  %v426_v55 = vld [vmem:[#allocation6 + $0x80] sm:$0xff]  ;;  %v411_v59 = vld [vmem:[#allocation6 + $0x8] sm:$0xff]  ;;  %v412_v0 = vld [vmem:[#allocation6 + $0x10] sm:$0xff] }
  0x52   :  { %v410_v57 = vld [vmem:[#allocation6] sm:$0xff]  ;;  %v642_v58 = vpack.c.bf16 %v427_v56, %v426_v55  ;;  %v413_v1 = vld [vmem:[#allocation6 + $0x18] sm:$0xff]  ;;  %v415_v7 = vld [vmem:[#allocation6 + $0x28] sm:$0xff] }
  0x53   :  { %601 = vmatpush1.bf16.msra.mxu1 %v600_v60  ;;  %v428_v60 = vld [vmem:[#allocation6 + $0x90] sm:$0xff]  ;;  %v644_v62 = vpack.c.bf16 %v411_v59, %v410_v57  ;;  %v648_v4 = vpack.c.bf16 %v413_v1, %v412_v0  ;;  %v414_v6 = vld [vmem:[#allocation6 + $0x20] sm:$0xff]  ;;  %v417_v13 = vld [vmem:[#allocation6 + $0x38] sm:$0xff] }
  0x54   :  { %603 = vmatprep.subr.bf16.mxu1 %v602_v61  ;;  %v429_v61 = vld [vmem:[#allocation6 + $0x98] sm:$0xff]  ;;  %643 = vmatprep.subr.bf16.mxu0 %v642_v58  ;;  %v652_v10 = vpack.c.bf16 %v415_v7, %v414_v6  ;;  %v416_v12 = vld [vmem:[#allocation6 + $0x30] sm:$0xff]  ;;  %v418_v18 = vld [vmem:[#allocation6 + $0x40] sm:$0xff] }
  0x55   :  { %v646_v63 = vpack.c.bf16 %v429_v61, %v428_v60  ;;  %645 = vmatpush3.bf16.msra.mxu0 %v644_v62  ;;  %v656_v16 = vpack.c.bf16 %v417_v13, %v416_v12  ;;  %v419_v19 = vld [vmem:[#allocation6 + $0x48] sm:$0xff]  ;;  %v420_v24 = vld [vmem:[#allocation6 + $0x50] sm:$0xff]  ;;  %v421_v25 = vld [vmem:[#allocation6 + $0x58] sm:$0xff] }
  0x56   :  { %v660_v22 = vpack.c.bf16 %v419_v19, %v418_v18  ;;  %v664_v28 = vpack.c.bf16 %v421_v25, %v420_v24  ;;  %v422_v43 = vld [vmem:[#allocation6 + $0x60] sm:$0xff]  ;;  %v440_v46 = vld [vmem:[#allocation6 + $0xf0] sm:$0xff]  ;;  %v441_v47 = vld [vmem:[#allocation6 + $0xf8] sm:$0xff] }
  0x57   :  { %605 = vmatpush1.bf16.msra.mxu1 %v604_v2  ;;  %v430_v2 = vld [vmem:[#allocation6 + $0xa0] sm:$0xff]  ;;  %647 = vmatprep.subr.bf16.mxu0 %v646_v63  ;;  %v424_v49 = vld [vmem:[#allocation6 + $0x70] sm:$0xff]  ;;  %v425_v50 = vld [vmem:[#allocation6 + $0x78] sm:$0xff] }
  0x58   :  { %607 = vmatprep.subr.bf16.mxu1 %v606_v3  ;;  %v431_v3 = vld [vmem:[#allocation6 + $0xa8] sm:$0xff]  ;;  %v325_v52 = vld [vmem:[%s885_s6] sm:$0x3] }
  0x59   :  { %v650_v5 = vpack.c.bf16 %v431_v3, %v430_v2  ;;  %649 = vmatpush3.bf16.msra.mxu0 %v648_v4  ;;  %v530_v62 = vld [vmem:[%s887_s8] ss:$0 sm:$0xff] }
  0x5b   :  { %609 = vmatpush1.bf16.msra.mxu1 %v608_v8  ;;  %v432_v8 = vld [vmem:[#allocation6 + $0xb0] sm:$0xff]  ;;  %651 = vmatprep.subr.bf16.mxu0 %v650_v5 }
  0x5c   :  { %611 = vmatprep.subr.bf16.mxu1 %v610_v9  ;;  %v433_v9 = vld [vmem:[#allocation6 + $0xb8] sm:$0xff] }
  0x5d   :  { %v654_v11 = vpack.c.bf16 %v433_v9, %v432_v8  ;;  %653 = vmatpush3.bf16.msra.mxu0 %v652_v10 }
  0x5f   :  { %613 = vmatpush1.bf16.msra.mxu1 %v612_v14  ;;  %v434_v14 = vld [vmem:[#allocation6 + $0xc0] sm:$0xff]  ;;  %655 = vmatprep.subr.bf16.mxu0 %v654_v11 }
  0x60   :  { %615 = vmatprep.subr.bf16.mxu1 %v614_v15  ;;  %v435_v15 = vld [vmem:[#allocation6 + $0xc8] sm:$0xff] }
  0x61   :  { %v658_v17 = vpack.c.bf16 %v435_v15, %v434_v14  ;;  %657 = vmatpush3.bf16.msra.mxu0 %v656_v16 }
  0x63   :  { %617 = vmatpush1.bf16.msra.mxu1 %v616_v20  ;;  %v436_v20 = vld [vmem:[#allocation6 + $0xd0] sm:$0xff]  ;;  %659 = vmatprep.subr.bf16.mxu0 %v658_v17 }
  0x64   :  { %619 = vmatprep.subr.bf16.mxu1 %v618_v21  ;;  %v437_v21 = vld [vmem:[#allocation6 + $0xd8] sm:$0xff] }
  0x65   :  { %v662_v23 = vpack.c.bf16 %v437_v21, %v436_v20  ;;  %661 = vmatpush3.bf16.msra.mxu0 %v660_v22 }
  0x67   :  { %621 = vmatpush1.bf16.msra.mxu1 %v620_v26  ;;  %v438_v26 = vld [vmem:[#allocation6 + $0xe0] sm:$0xff]  ;;  %663 = vmatprep.subr.bf16.mxu0 %v662_v23 }
  0x68   :  { %623 = vmatprep.subr.bf16.mxu1 %v622_v27  ;;  %v439_v27 = vld [vmem:[#allocation6 + $0xe8] sm:$0xff] }
  0x69   :  { %v666_v29 = vpack.c.bf16 %v439_v27, %v438_v26  ;;  %665 = vmatpush3.bf16.msra.mxu0 %v664_v28 }
  0x6b   :  { %625 = vmatpush1.bf16.msra.mxu1 %v624_v32  ;;  %667 = vmatprep.subr.bf16.mxu0 %v666_v29  ;;  %v249_v32 = vsub.s32 0, %v248_v31 }
  0x6c   :  { %627 = vmatprep.subr.bf16.mxu1 %v626_v33  ;;  %v245_v33 = vld [vmem:[%s883_s4] sm:$0x3] }
  0x6d   :  { %v250_v35 = vrot.slane %v245_v33, %v249_v32  ;;  %v254_v36 = vrot.slane %v245_v33, %v253_v34  ;;  %v330_v53 = vrot.slane %v325_v52, %v249_v32 }
  0x6f   :  { %629 = vmatpush1.bf16.msra.mxu1 %v628_v38 }
  0x70   :  { %631 = vmatprep.subr.bf16.mxu1 %v630_v39 }
  0x73   :  { %633 = vmatpush1.bf16.msra.mxu1 %v632_v44  ;;  %v423_v44 = vld [vmem:[#allocation6 + $0x68] sm:$0xff] }
  0x74   :  { %635 = vmatprep.subr.bf16.mxu1 %v634_v45  ;;  %v668_v45 = vpack.c.bf16 %v423_v44, %v422_v43 }
  0x76   :  { %669 = vmatpush3.bf16.msra.mxu0 %v668_v45 }
  0x77   :  { %637 = vmatpush1.bf16.msra.mxu1 %v636_v48  ;;  %v670_v48 = vpack.c.bf16 %v441_v47, %v440_v46 }
  0x78   :  { %639 = vmatprep.subr.bf16.mxu1 %v638_v51  ;;  %v672_v51 = vpack.c.bf16 %v425_v50, %v424_v49 }
  0x79   :  { %671 = vmatprep.subr.bf16.mxu0 %v670_v48 }
  0x7a   :  { %673 = vmatpush3.bf16.msra.mxu0 %v672_v51 }
  0x7b   :  { %641 = vmatpush1.bf16.msra.mxu1 %v640_v54  ;;  %v334_v54 = vrot.slane %v325_v52, %v253_v34 }
 0x11a   :  { %v240_v37 = vpop.f32.mrb[0].mxu0 }
 0x11b   :  { %v257_v38 = vadd.f32 %v250_v35, %v240_v37  ;;  %v242_v39 = vpop.f32.mrb[1].mxu0 }
 0x11c   :  { %v258_v40 = vadd.f32 %v254_v36, %v242_v39 }
 0x11d   :  { %v259_v42 = vmax.f32 %v257_v38, 0.0 }
 0x11e   :  { %v260_v41 = vmax.f32 %v258_v40, 0.0 }
 0x120   :  { %401 = vmatprep.mubr.f32.mxu1 %v260_v41 }
 0x121   :  { %402 = vmatmul.mubr.f32.vlgmr.msra.gmra.mrb[0].mxu1 %v259_v42 }
 0x1f4   :  { %v403_v55 = vpop.f32.mrb[0].mxu1 }
 0x1f5   :  { %v404_v56 = vadd.f32 %v403_v55, %v330_v53  ;;  %v405_v57 = vpop.f32.mrb[1].mxu1 }
 0x1f6   :  { %v406_v58 = vadd.f32 %v405_v57, %v334_v54 }
 0x1f7   :  { %v408_v60 = vmax.f32 %v404_v56, 0.0 }
 0x1f8   :  { %v409_v59 = vmax.f32 %v406_v58, 0.0 }
 0x1fa   :  { %513 = vmatprep.mubr.f32.mxu0 %v409_v59 }
 0x1fb   :  { %514 = vmatmul.mubr.f32.vlgmr.msra.gmra.mrb[2].mxu0 %v408_v60 }
 0x2ce   :  { %v563_v61 = vpop.f32.mrb[2].mxu0 }
 0x2cf   :  { %v564_v63 = vpop.f32.mrb[3].mxu0 }
 0x2d0   :  { %v565_v0 = vadd.f32 %v564_v63, %v563_v61 }
 0x2d2   :  { %v516_v1 = vadd.f32 %v565_v0, %v530_v62 }
 0x2d4   :  { %519 = vst [vmem:[%s888_s9] sm:$0xff] %v516_v1 }
 0x2d5   :  { %524 = vsyncpa [#allocation3], 1 }
 0x2d6   :  { %525 = vsyncpa [#allocation5], 1 }

</bundles_post_ra>
